<compile_context>
chip_gen: v7x
topology: tpu7x:2x2x1
jax: 0.10.0
libtpu: 0.0.40
codegen_flags: <defaults>
</compile_context>

<pallas_src>
import functools

import jax
import jax.numpy as jnp
from jax.experimental import pallas as pl
from jax.experimental.pallas import tpu as pltpu


def _round_up(x: int, m: int) -> int:
    return ((x + m - 1) // m) * m


def _merge_layer_kernel(x1_ref, x2_ref, w1a_ref, w1b_ref, b1_ref, w2_ref, b2_ref,
                        out_ref):
    # x1_ref: (TM, D1) f32   x2_ref: (TM, D2) f32
    # w1a_ref: (D1, Hp) bf16 w1b_ref: (D2, Hp) bf16  b1_ref: (1, Hp) f32
    # w2_ref:  (Hp, Op) bf16                          b2_ref: (1, Op) f32
    # out_ref: (TM, Op) f32
    x1 = x1_ref[...].astype(jnp.bfloat16)   # cast in VMEM: no extra HBM pass
    x2 = x2_ref[...].astype(jnp.bfloat16)
    h = jnp.dot(x1, w1a_ref[...], preferred_element_type=jnp.float32)
    h = h + jnp.dot(x2, w1b_ref[...], preferred_element_type=jnp.float32)
    h = h + b1_ref[...]
    h = jnp.maximum(h, jnp.float32(0.0))                            # ReLU (f32)
    out = jnp.dot(h.astype(jnp.bfloat16), w2_ref[...],
                  preferred_element_type=jnp.float32) + b2_ref[...]
    out_ref[...] = out.astype(out_ref.dtype)
    # NOTE: final sigmoid intentionally NOT applied — PyTorch forward() returns h.


@functools.partial(jax.jit, static_argnames=("tile_m",))
def merge_layer(input_1, input_2, w1, b1, w2, b2, *, tile_m: int = 512):
    """input_1: (N, D1), input_2: (N, D2) -> (N, output_dim) float32.

    w1: (D1+D2, H), b1: (H,), w2: (H, O), b2: (O,)  (torch weights transposed).
    """
    n, d1 = input_1.shape
    d2 = input_2.shape[1]
    d_in = d1 + d2
    h_dim = w1.shape[1]
    o_dim = w2.shape[1]

    # Pad hidden / output dims of the (small) weights to multiples of 128 so the
    # hidden activation and the store path are lane-dense (unmasked vst).
    h_pad = _round_up(h_dim, 128)
    o_pad = _round_up(o_dim, 128)

    w1a = w1[:d1]
    w1b = w1[d1:]
    if h_pad != h_dim:
        w1a = jnp.pad(w1a, ((0, 0), (0, h_pad - h_dim)))
        w1b = jnp.pad(w1b, ((0, 0), (0, h_pad - h_dim)))
        b1 = jnp.pad(b1, (0, h_pad - h_dim))
        w2 = jnp.pad(w2, ((0, h_pad - h_dim), (0, 0)))
    if o_pad != o_dim:
        w2 = jnp.pad(w2, ((0, 0), (0, o_pad - o_dim)))
        b2 = jnp.pad(b2, (0, o_pad - o_dim))
    w1a = w1a.astype(jnp.bfloat16)
    w1b = w1b.astype(jnp.bfloat16)
    w2 = w2.astype(jnp.bfloat16)
    b1 = b1.astype(jnp.float32).reshape(1, h_pad)
    b2 = b2.astype(jnp.float32).reshape(1, o_pad)

    # ---- Row tile selection ------------------------------------------------
    tm = min(tile_m, _round_up(n, 8))
    tm = max(8, (tm // 8) * 8)
    # Guarantee >= 2 grid steps when possible so v7x's 2 TCs both get work.
    if pl.cdiv(n, tm) < 2 and n > 8:
        tm = max(8, _round_up(pl.cdiv(n, 2), 8))

    def _vmem_bytes(t):
        return (2 * t * d_in * 4          # x1, x2 tiles, double-buffered, f32
                + 2 * t * o_pad * 4       # output tile, double-buffered, f32
                + t * h_pad * 4           # hidden-activation temporary, f32
                + (d_in * h_pad + h_pad * o_pad) * 2   # bf16 weights (1 buffer)
                + (h_pad + o_pad) * 4)    # biases

    # Stay well under v7x's 64 MiB physical VMEM; shrink tile if needed.
    while tm > 8 and _vmem_bytes(tm) > 48 * 1024 * 1024:
        tm = max(8, ((tm // 2) // 8) * 8)

    grid = (pl.cdiv(n, tm),)
    vmem_limit = int(min(max(2 * _vmem_bytes(tm), 32 * 1024 * 1024),
                         56 * 1024 * 1024))

    cost = pl.CostEstimate(
        flops=2 * n * (d_in * h_pad + h_pad * o_pad),
        transcendentals=0,
        bytes_accessed=(4 * n * (d_in + o_pad)
                        + 2 * (d_in * h_pad + h_pad * o_pad)
                        + 4 * (h_pad + o_pad)),
    )

    out = pl.pallas_call(
        _merge_layer_kernel,
        out_shape=jax.ShapeDtypeStruct((n, o_pad), jnp.float32),
        grid=grid,
        in_specs=[
            pl.BlockSpec((tm, d1), lambda i: (i, 0)),                 # x1 tile
            pl.BlockSpec((tm, d2), lambda i: (i, 0)),                 # x2 tile
            pl.BlockSpec((d1, h_pad), lambda i: (0, 0),
                         pipeline_mode=pl.Buffered(1)),               # W1[:D1]
            pl.BlockSpec((d2, h_pad), lambda i: (0, 0),
                         pipeline_mode=pl.Buffered(1)),               # W1[D1:]
            pl.BlockSpec((1, h_pad), lambda i: (0, 0),
                         pipeline_mode=pl.Buffered(1)),               # b1
            pl.BlockSpec((h_pad, o_pad), lambda i: (0, 0),
                         pipeline_mode=pl.Buffered(1)),               # W2
            pl.BlockSpec((1, o_pad), lambda i: (0, 0),
                         pipeline_mode=pl.Buffered(1)),               # b2
        ],
        out_specs=pl.BlockSpec((tm, o_pad), lambda i: (i, 0)),
        compiler_params=pltpu.CompilerParams(
            dimension_semantics=("parallel",),
            vmem_limit_bytes=vmem_limit,
        ),
        cost_estimate=cost,
    )(input_1, input_2, w1a, w1b, b1, w2, b2)

    return out[:, :o_dim] if o_pad != o_dim else out


if __name__ == "__main__":
    import numpy as np

    # Small shapes; batch deliberately not a multiple of the row tile so the
    # ragged-last-tile path and the >=2-grid-step path are both exercised.
    batch, d1, d2, hidden, out_dim = 12, 24, 40, 64, 32

    key = jax.random.PRNGKey(0)
    k1, k2, k3, k4, k5, k6 = jax.random.split(key, 6)
    input_1 = jax.random.normal(k1, (batch, d1), jnp.float32)
    input_2 = jax.random.normal(k2, (batch, d2), jnp.float32)
    # Linear params stored as (in, out) — i.e. torch weight transposed.
    w1 = jax.random.uniform(k3, (d1 + d2, hidden), jnp.float32, minval=-0.1, maxval=0.1)
    b1 = jax.random.uniform(k4, (hidden,), jnp.float32, minval=-0.1, maxval=0.1)
    w2 = jax.random.uniform(k5, (hidden, out_dim), jnp.float32, minval=-0.1, maxval=0.1)
    b2 = jax.random.uniform(k6, (out_dim,), jnp.float32, minval=-0.1, maxval=0.1)

    out = merge_layer(input_1, input_2, w1, b1, w2, b2)
    out = jax.block_until_ready(out)

    # float64 numpy reference (mirrors MergeLayer.forward)
    x_np = np.concatenate([np.asarray(input_1), np.asarray(input_2)], axis=1).astype(np.float64)
    h_np = np.maximum(x_np @ np.asarray(w1, np.float64) + np.asarray(b1, np.float64), 0.0)
    ref = h_np @ np.asarray(w2, np.float64) + np.asarray(b2, np.float64)

    # bf16 MXU operands -> loosened tolerance.
    np.testing.assert_allclose(np.asarray(out), ref.astype(np.float32), rtol=2e-2, atol=2e-2)
    print("KERNEL_OK")
</pallas_src>

<mosaic_0001>
module attributes {stable_mosaic.version = 11 : i64} {
  func.func @_merge_layer_kernel(%arg0: i32, %arg1: memref<8x24xf32, #tpu.memory_space<vmem>>, %arg2: memref<8x40xf32, #tpu.memory_space<vmem>>, %arg3: memref<24x128xbf16, #tpu.memory_space<vmem>>, %arg4: memref<40x128xbf16, #tpu.memory_space<vmem>>, %arg5: memref<1x128xf32, #tpu.memory_space<vmem>>, %arg6: memref<128x128xbf16, #tpu.memory_space<vmem>>, %arg7: memref<1x128xf32, #tpu.memory_space<vmem>>, %arg8: memref<8x128xf32, #tpu.memory_space<vmem>>) attributes {dimension_semantics = [#tpu.dimension_semantics<parallel>], iteration_bounds = array<i64: 2>, scalar_prefetch = 0 : i64, scratch_operands = 0 : i64, tpu.core_type = #tpu.core_type<tc>, window_params = [{transform_indices = @transform_0, window_bounds = array<i64: 8, 24>}, {transform_indices = @transform_1, window_bounds = array<i64: 8, 40>}, {pipeline_mode = #tpu.pipeline_mode<synchronous>, transform_indices = @transform_2, window_bounds = array<i64: 24, 128>}, {pipeline_mode = #tpu.pipeline_mode<synchronous>, transform_indices = @transform_3, window_bounds = array<i64: 40, 128>}, {pipeline_mode = #tpu.pipeline_mode<synchronous>, transform_indices = @transform_4, window_bounds = array<i64: 1, 128>}, {pipeline_mode = #tpu.pipeline_mode<synchronous>, transform_indices = @transform_5, window_bounds = array<i64: 128, 128>}, {pipeline_mode = #tpu.pipeline_mode<synchronous>, transform_indices = @transform_6, window_bounds = array<i64: 1, 128>}, {transform_indices = @transform_7, window_bounds = array<i64: 8, 128>}]} {
    %c0 = arith.constant 0 : index
    %c0_0 = arith.constant 0 : index
    %0 = vector.load %arg1[%c0, %c0_0] : memref<8x24xf32, #tpu.memory_space<vmem>>, vector<8x24xf32>
    %1 = arith.truncf %0 : vector<8x24xf32> to vector<8x24xbf16>
    %c0_1 = arith.constant 0 : index
    %c0_2 = arith.constant 0 : index
    %2 = vector.load %arg2[%c0_1, %c0_2] : memref<8x40xf32, #tpu.memory_space<vmem>>, vector<8x40xf32>
    %3 = arith.truncf %2 : vector<8x40xf32> to vector<8x40xbf16>
    %c0_3 = arith.constant 0 : index
    %c0_4 = arith.constant 0 : index
    %4 = vector.load %arg3[%c0_3, %c0_4] : memref<24x128xbf16, #tpu.memory_space<vmem>>, vector<24x128xbf16>
    %cst = arith.constant dense<0.000000e+00> : vector<8x128xf32>
    %5 = tpu.matmul %1, %4, %cst {dimension_numbers = #tpu.dot_dimension_numbers<[1], [0], [0], [1], [0, 0, 1, 1], [], []>} : vector<8x24xbf16>, vector<24x128xbf16>, vector<8x128xf32> -> vector<8x128xf32>
    %c0_5 = arith.constant 0 : index
    %c0_6 = arith.constant 0 : index
    %6 = vector.load %arg4[%c0_5, %c0_6] : memref<40x128xbf16, #tpu.memory_space<vmem>>, vector<40x128xbf16>
    %cst_7 = arith.constant dense<0.000000e+00> : vector<8x128xf32>
    %7 = tpu.matmul %3, %6, %cst_7 {dimension_numbers = #tpu.dot_dimension_numbers<[1], [0], [0], [1], [0, 0, 1, 1], [], []>} : vector<8x40xbf16>, vector<40x128xbf16>, vector<8x128xf32> -> vector<8x128xf32>
    %8 = arith.addf %5, %7 : vector<8x128xf32>
    %c0_8 = arith.constant 0 : index
    %c0_9 = arith.constant 0 : index
    %9 = vector.load %arg5[%c0_8, %c0_9] : memref<1x128xf32, #tpu.memory_space<vmem>>, vector<1x128xf32>
    %10 = vector.broadcast %9 : vector<1x128xf32> to vector<8x128xf32>
    %11 = arith.addf %8, %10 : vector<8x128xf32>
    %cst_10 = arith.constant 0.000000e+00 : f32
    %12 = vector.broadcast %cst_10 : f32 to vector<8x128xf32>
    %13 = arith.maximumf %11, %12 : vector<8x128xf32>
    %14 = arith.truncf %13 : vector<8x128xf32> to vector<8x128xbf16>
    %c0_11 = arith.constant 0 : index
    %c0_12 = arith.constant 0 : index
    %15 = vector.load %arg6[%c0_11, %c0_12] : memref<128x128xbf16, #tpu.memory_space<vmem>>, vector<128x128xbf16>
    %cst_13 = arith.constant dense<0.000000e+00> : vector<8x128xf32>
    %16 = tpu.matmul %14, %15, %cst_13 {dimension_numbers = #tpu.dot_dimension_numbers<[1], [0], [0], [1], [0, 0, 1, 1], [], []>} : vector<8x128xbf16>, vector<128x128xbf16>, vector<8x128xf32> -> vector<8x128xf32>
    %c0_14 = arith.constant 0 : index
    %c0_15 = arith.constant 0 : index
    %17 = vector.load %arg7[%c0_14, %c0_15] : memref<1x128xf32, #tpu.memory_space<vmem>>, vector<1x128xf32>
    %18 = vector.broadcast %17 : vector<1x128xf32> to vector<8x128xf32>
    %19 = arith.addf %16, %18 : vector<8x128xf32>
    %c0_16 = arith.constant 0 : index
    %c0_17 = arith.constant 0 : index
    %20 = vector.load %arg8[%c0_16, %c0_17] : memref<8x128xf32, #tpu.memory_space<vmem>>, vector<8x128xf32>
    tpu.vector_store %arg8[%c0_16, %c0_17], %19 {strides = array<i32>} : memref<8x128xf32, #tpu.memory_space<vmem>>, vector<8x128xf32>,
    return
  }
  func.func @transform_0(%arg0: i32) -> (i32, i32) {
    %c0_i32 = arith.constant 0 : i32
    %c0_i32_0 = arith.constant 0 : i32
    return %arg0, %c0_i32 : i32, i32
  }
  func.func @transform_1(%arg0: i32) -> (i32, i32) {
    %c0_i32 = arith.constant 0 : i32
    %c0_i32_0 = arith.constant 0 : i32
    return %arg0, %c0_i32 : i32, i32
  }
  func.func @transform_2(%arg0: i32) -> (i32, i32) {
    %c0_i32 = arith.constant 0 : i32
    %c0_i32_0 = arith.constant 0 : i32
    %c0_i32_1 = arith.constant 0 : i32
    return %c0_i32, %c0_i32_0 : i32, i32
  }
  func.func @transform_3(%arg0: i32) -> (i32, i32) {
    %c0_i32 = arith.constant 0 : i32
    %c0_i32_0 = arith.constant 0 : i32
    %c0_i32_1 = arith.constant 0 : i32
    return %c0_i32, %c0_i32_0 : i32, i32
  }
  func.func @transform_4(%arg0: i32) -> (i32, i32) {
    %c0_i32 = arith.constant 0 : i32
    %c0_i32_0 = arith.constant 0 : i32
    %c0_i32_1 = arith.constant 0 : i32
    return %c0_i32, %c0_i32_0 : i32, i32
  }
  func.func @transform_5(%arg0: i32) -> (i32, i32) {
    %c0_i32 = arith.constant 0 : i32
    %c0_i32_0 = arith.constant 0 : i32
    %c0_i32_1 = arith.constant 0 : i32
    return %c0_i32, %c0_i32_0 : i32, i32
  }
  func.func @transform_6(%arg0: i32) -> (i32, i32) {
    %c0_i32 = arith.constant 0 : i32
    %c0_i32_0 = arith.constant 0 : i32
    %c0_i32_1 = arith.constant 0 : i32
    return %c0_i32, %c0_i32_0 : i32, i32
  }
  func.func @transform_7(%arg0: i32) -> (i32, i32) {
    %c0_i32 = arith.constant 0 : i32
    %c0_i32_0 = arith.constant 0 : i32
    return %arg0, %c0_i32 : i32, i32
  }
}

</mosaic_0001>

<bundles_post_ra>
// kernel: merge_layer.1
= control target key start
LH: loop header
LB: loop body
LE: loop exit
PB: predicated region body
PF: predicated region fallthrough
CT: control target
= control target key end

     0   :  { %12 = vsyncpa [#allocation3], 0  ;;  %s1026_s0 = inlined_call_operand.vmem [shape: f32[12,24], index: 0, kind: input, shape index: {}]   ;;  %s1027_s1 = inlined_call_operand.vmem [shape: f32[12,40], index: 1, kind: input, shape index: {}]   ;;  %s1028_s2 = inlined_call_operand.vmem [shape: bf16[24,128], index: 2, kind: input, shape index: {}]   ;;  %s1029_s3 = inlined_call_operand.vmem [shape: bf16[40,128], index: 3, kind: input, shape index: {}]   ;;  %s1030_s4 = inlined_call_operand.vmem [shape: f32[1,128], index: 4, kind: input, shape index: {}]   ;;  %s1031_s5 = inlined_call_operand.vmem [shape: bf16[128,128], index: 5, kind: input, shape index: {}]   ;;  %s1032_s6 = inlined_call_operand.vmem [shape: f32[1,128], index: 6, kind: input, shape index: {}]   ;;  %s1033_s7 = inlined_call_operand.hbm [shape: f32[12,128], index: 7, kind: output, shape index: {}]  }
   0x1   :  { %14 = vsyncpa [#allocation3 + $0x1], 0  ;;  %s873_s24 = smov 0   ;;  %s875_s25 = smov 0  }
   0x2   :  { %s877_s26 = smov 0   ;;  %s879_s27 = smov 0  }
   0x3 LB: > { %s894_s28 = sadd.s32 4294967295, %s828_s27   ;;  %s630_s29 = sadd.s32 4294967294, %s828_s27   ;;  %s828_s27 = sphi %s879_s27, %s1039_s27   ;;  %s824_s26 = sphi %s877_s26, %s1038_s26   ;;  %s820_s25 = sphi %s875_s25, %s1037_s25   ;;  %s816_s24 = sphi %s873_s24, %s1036_s24  }
   0x4   : > { %s898_s30 = sadd.s32 1, %s828_s27   ;;  %s184_s8 = sadd.s32 1, %s824_s26 }
   0x5   : > { %s181_s9 = ssub.s32 %s828_s27, %s898_s30  ;;  %p194_p0 = scmp.ne.s32.totalorder %s824_s26, %s820_s25 }
   0x6   : > { %p182_p1 = scmp.eq.s32.totalorder %s181_s9, 0  ;;  %p195_p2 = scmp.eq.s32.totalorder %s894_s28, 1 }
   0x7   : > { %p200_p3 = scmp.ne.s32.totalorder %s820_s25, %s816_s24  ;;  %p201_p4 = scmp.eq.s32.totalorder %s630_s29, 1 }
   0x8   : > { %s909_s10 = scalar_select %p182_p1, %s824_s26, %s184_s8  }
   0x9   : > { %p911_p5 = por %p195_p2, %p194_p0  ;;  %p915_p6 = por %p201_p4, %p200_p3 }
   0xa   : > { %p633_p7 = scmp.ge.s32.totalorder %s828_s27, 1  ;;  %p248_p8 = scmp.lt.s32.totalorder %s828_s27, 3 }
   0xc   : > { %p249_p9 = pnand %p633_p7, %p248_p8 }
   0xd   : > { %v753_v0 = vld [vmem:[%s1029_s3] sm:$0xff] (!%p249_p9)   ;;  %v830_v1 = vmov (!%p249_p9), 0.0   ;;  %v754_v2 = vld [vmem:[%s1029_s3 + $0x8] sm:$0xff] (!%p249_p9)   ;;  %p283_p10 = scmp.lt.s32.totalorder (!%p249_p9), %s894_s28, 1  ;;  %v755_v3 = vld [vmem:[%s1029_s3 + $0x10] ss:$0 sps:$4 sm:$0xff] (!%p249_p9)  }
   0xe   : > { %252 = sbr.rel (%p249_p9) target bundleno = 484 (0x1e4), region = 48  ;;  %674 = vmatprep.subr.bf16.mxu0 (!%p249_p9), %v830_v1  ;;  %692 = vmatprep.subr.bf16.mxu1 (!%p249_p9), %v830_v1  ;;  %vm831_vm0 = vmmov (!%p249_p9), 0   ;;  %vm323_vm1 = vcmask (!%p249_p9), 1043456   ;;  %v758_v4 = vld [vmem:[%s1031_s5] sm:$0xff] (!%p249_p9)   ;;  %v759_v6 = vld [vmem:[%s1031_s5 + $0x8] sm:$0xff] (!%p249_p9)   ;;  %vm319_vm2 = vcmask (!%p249_p9), 326656  }
   0xf   : > { %675 = vmatpush3.bf16.msra.mxu0 (!%p249_p9), %v753_v0  ;;  %680 = vmatprep.mubr.msk.bf16.mxu0 (!%p249_p9), %vm831_vm0, %v830_v1  ;;  %v325_v5 = vsel (!%p249_p9), %vm323_vm1, %v755_v3, 0  ;;  %v756_v8 = vld [vmem:[%s1028_s2] sm:$0xff] (!%p249_p9)   ;;  %v757_v10 = vld [vmem:[%s1028_s2 + $0x8] ss:$0 sps:$4 sm:$0xff] (!%p249_p9)   ;;  %v760_v11 = vld [vmem:[%s1031_s5 + $0x10] sm:$0xff] (!%p249_p9)   ;;  %vm376_vm3 = vcmask (!%p249_p9), 195584  }
  0x10   : > { %676 = vmatprep.subr.bf16.mxu0 (!%p249_p9), %v830_v1  ;;  %708 = vmatprep.mubr.msk.bf16.mxu1 (!%p249_p9), %vm831_vm0, %v830_v1  ;;  %v381_v13 = vsel (!%p249_p9), %vm323_vm1, %v757_v10, 0  ;;  %v761_v14 = vld [vmem:[%s1031_s5 + $0x18] sm:$0xff] (!%p249_p9)   ;;  %v762_v16 = vld [vmem:[%s1031_s5 + $0x20] sm:$0xff] (!%p249_p9)   ;;  %v763_v17 = vld [vmem:[%s1031_s5 + $0x28] sm:$0xff] (!%p249_p9)   ;;  %s280_s21 = sand.u32 (!%p249_p9), 1, %s820_s25   ;;  %s832_s18 = smov (!%p249_p9), [#allocation2]  }
  0x11   : > { %693 = vmatpush3.bf16.msra.mxu1 (!%p249_p9), %v758_v4  ;;  %v764_v18 = vld [vmem:[%s1031_s5 + $0x30] sm:$0xff] (!%p249_p9)   ;;  %v765_v19 = vld [vmem:[%s1031_s5 + $0x38] sm:$0xff] (!%p249_p9)   ;;  %v644_v25 = vld [vmem:[%s1030_s4] ss:$0 sm:$0xff] (!%p249_p9)  ;;  %s546_s17 = scalar_lea.sflag (!%p249_p9), [#allocation3], %s280_s21 }
  0x12   : > { %694 = vmatprep.subr.bf16.mxu1 (!%p249_p9), %v830_v1  ;;  %v645_v33 = vld [vmem:[%s1032_s6] ss:$0 sm:$0xff] (!%p249_p9) }
  0x13   : > { %677 = vmatpush3.bf16.msra.mxu0 (!%p249_p9), %v754_v2 }
  0x14   : > { %678 = vmatprep.subr.bf16.mxu0 (!%p249_p9), %v830_v1 }
  0x15   : > { %s284_s19 = scalar_select %p283_p10, %s894_s28, 1  ;;  %695 = vmatpush3.bf16.msra.mxu1 %v759_v6 }
  0x16   : > { %696 = vmatprep.subr.bf16.mxu1 %v830_v1 }
  0x17   : > { %s635_s22 = sshll.u32 %s284_s19, 3  ;;  %679 = vmatpush3.bf16.msra.mxu0 %v325_v5  ;;  %s770_s19 = sshll.u32 %s832_s18, 4  ;;  %s771_s19 = int_to_ptr.vmem [resolvable:$false] %s770_s19 }
  0x18   : > { %s290_s8 = scalar_lea.vmem %s1027_s1, %s635_s22  ;;  %s286_s23 = scalar_lea.vmem %s1026_s0, %s635_s22  ;;  %684 = vmatprep.subr.bf16.mxu0 %v830_v1 }
  0x19   : > { %v294_v7 = vld [vmem:[%s290_s8] sm:$0xff]  ;;  %697 = vmatpush3.bf16.msra.mxu1 %v760_v11  ;;  %s655_s22 = sshll.u32 %s894_s28, 7  ;;  %s772_s20 = scalar_lea.vmem %s771_s19, 256 }
  0x1a   : > { %v295_v9 = vpack.c.bf16 %v294_v7, %v294_v7  ;;  %v292_v12 = vld [vmem:[%s286_s23] sm:$0xff]  ;;  %698 = vmatprep.subr.bf16.mxu1 %v830_v1  ;;  %s634_s23 = sshll.u32 %s280_s21, 3  ;;  %s984_s16 = scalar_lea.hbm %s1033_s7, %s655_s22 }
  0x1b   : > { %v293_v15 = vpack.c.bf16 %v292_v12, %v292_v12  ;;  %s282_s9 = scalar_lea.vmem [#allocation2], %s634_s23 }
  0x1c   : > { %681 = vmatmul.mubr.msk.bf16.vlgmr.msra.gmra.mrb[0].mxu0 %vm319_vm2, %v295_v9  ;;  %s559_s13 = sshll.u32 %s282_s9, 4  ;;  %s986_s13 = int_to_ptr.vmem [resolvable:$true] %s559_s13 }
  0x1d   : > { %685 = vmatpush3.bf16.msra.mxu0 %v756_v8  ;;  %688 = vmatprep.mubr.msk.bf16.mxu0 %vm831_vm0, %v830_v1  ;;  %s766_s28 = scalar_lea.vmem %s986_s13, 128  ;;  %p773_p0 = scmp.lt.s32.totalorder %s986_s13, %s771_s19 }
  0x1e   : > { %686 = vmatprep.subr.bf16.mxu0 %v830_v1  ;;  %699 = vmatpush3.bf16.msra.mxu1 %v761_v14  ;;  %p767_p11 = scmp.ne.s32.totalorder %s986_s13, %s766_s28  ;;  %p774_p1 = scmp.lt.s32.totalorder %s772_s20, %s766_s28 }
  0x1f   : > { %700 = vmatprep.subr.bf16.mxu1 %v830_v1 }
  0x20   : > { %p768_p12 = pnand %p767_p11, %p911_p5  ;;  %p775_p2 = por %p774_p1, %p773_p0 }
  0x21   : > { %687 = vmatpush3.bf16.msra.mxu0 %v381_v13 }
  0x22   : > { %701 = vmatpush3.bf16.msra.mxu1 %v762_v16  ;;  %p769_p13 = pneg %p768_p12 }
  0x23   : > { %702 = vmatprep.subr.bf16.mxu1 %v830_v1 }
  0x24   : > { %689 = vmatmul.mubr.msk.bf16.vlgmr.msra.gmra.mrb[4].mxu0 %vm376_vm3, %v293_v15  ;;  %p776_p3 = pnand %p775_p2, %p769_p13 }
  0x26   : > { %703 = vmatpush3.bf16.msra.mxu1 %v763_v17 }
  0x27   : > { %704 = vmatprep.subr.bf16.mxu1 %v830_v1 }
  0x2a   : > { %705 = vmatpush3.bf16.msra.mxu1 %v764_v18 }
  0x2b   : > { %706 = vmatprep.subr.bf16.mxu1 %v830_v1 }
  0x2e   : > { %707 = vmatpush3.bf16.msra.mxu1 %v765_v19 }
  0xef   : > { %v361_v20 = vpop.f32.mrb[0].mxu0 }
  0xf0   : > { %v682_v21 = vpop.f32.mrb[1].mxu0 }
  0xf1   : > { %v364_v22 = vpop.f32.mrb[2].mxu0 }
  0xf2   : > { %v683_v23 = vpop.f32.mrb[3].mxu0 }
  0xf7   : > { %v417_v24 = vpop.f32.mrb[4].mxu0 }
  0xf8   : > { %v418_v26 = vadd.f32 %v417_v24, %v361_v20  ;;  %v690_v27 = vpop.f32.mrb[5].mxu0 }
  0xf9   : > { %v420_v28 = vpop.f32.mrb[6].mxu0 }
  0xfa   : > { %v430_v29 = vadd.f32 %v644_v25, %v418_v26  ;;  %v691_v30 = vpop.f32.mrb[7].mxu0 }
  0xfc   : > { %v431_v31 = vmax.f32 %v430_v29, 0.0 }
  0xfe   : > { %v432_v32 = vpack.c.bf16 %v431_v31, %v431_v31 }
 0x100   : > { %709 = vmatmul.mubr.bf16.vlgmr.msra.gmra.mrb[0].mxu1 %v432_v32 }
 0x1d3   : > { %v538_v34 = vpop.f32.mrb[0].mxu1 }
 0x1d4   : > { %v539_v35 = vadd.f32 %v645_v33, %v538_v34  ;;  %v710_v36 = vpop.f32.mrb[1].mxu1 }
 0x1d5   : > { %v541_v37 = vpop.f32.mrb[2].mxu1 }
 0x1d6   : > { %544 = vst [vmem:[%s282_s9] sm:$0xff] %v539_v35  ;;  %v711_v38 = vpop.f32.mrb[3].mxu1 }
 0x1d7   : > { %779 = shalt.err (!%p776_p3)
}
 0x1d8   : > { %s780_s21 = scalar_lea.hbm %s984_s16, 128  ;;  %s784_s8 = scalar_lea.hbm %s1033_s7, 256 }
 0x1d9   : > { %p781_p4 = scmp.ne.s32.totalorder %s984_s16, %s780_s21  ;;  %p785_p9 = scmp.lt.u32.totalorder %s984_s16, %s1033_s7 }
 0x1da   : > { %p786_p10 = scmp.lt.u32.totalorder %s784_s8, %s780_s21  ;;  %p788_p12 = scmp.lt.u32.totalorder %s780_s21, %s984_s16 }
 0x1db   : > { %p782_p7 = pnand %p781_p4, %p911_p5 }
 0x1dc   : > { %p787_p11 = por %p786_p10, %p785_p9 }
 0x1dd   : > { %p783_p8 = pneg %p782_p7 }
 0x1de   : > { %p789_p13 = por %p788_p12, %p787_p11 }
 0x1e0   : > { %p790_p0 = pnand %p789_p13, %p783_p8 }
 0x1e2   : > { %793 = shalt.err (!%p790_p0)
}
 0x1e3   : > { %712 = dma.vmem_to_hbm [thread:$0]  (%p911_p5), %s986_s13, 128, %s984_s16, %s546_s17  }
 0x1e4 PF: > { %p718_p1 = scmp.ge.s32.totalorder %s828_s27, 2  ;;  %s571_s14 = sand.u32 1, %s816_s24  }
 0x1e5   : > { %s572_s15 = scalar_lea.sflag [#allocation3], %s571_s14 }
 0x1e6   : > { %p715_p2 = pnand %p718_p1, %p915_p6 }
 0x1e8   : > { %811 = dma.done.wait (!%p715_p2), %s572_s15, 128  }
 0x1e9   : > { %813 = vsyncadd (!%p715_p2), %s572_s15, 4294967168  ;;  %p17_p3 = scmp.ge.s32.totalorder %s898_s30, 4   ;;  %s1036_s24 = smov %s820_s25 }
 0x1ea   : > { %s1037_s25 = smov %s824_s26  ;;  %s1038_s26 = smov %s909_s10 }
 0x1eb   : > { %s1039_s27 = smov %s898_s30  ;;  %19 = sbr.rel (!%p17_p3) target bundleno = 3 (0x3), region = 86 }
 0x1f2   :  { %577 = vsyncpa [#allocation3], 1 }
 0x1f3   :  { %579 = vsyncpa [#allocation3 + $0x1], 1 }

</bundles_post_ra>
